<compile_context>
chip_gen: v6e
topology: v6e:2x2x1
jax: 0.10.0
libtpu: 0.0.40
codegen_flags: <defaults>
</compile_context>

<pallas_src>
import functools
import math

import jax
import jax.numpy as jnp
from jax.experimental import pallas as pl
from jax.experimental.pallas import tpu as pltpu


def _self_attention_kernel(x_ref, wqkv_ref, bqkv_ref, o_ref, *,
                           block_b, seq_len, d_pad, dot_dtype):
    x = x_ref[...]                                        # (rows, Dp), dot_dtype

    # Fused QKV projection: one tall MXU matmul with N = 3*Dp lane-dense
    # columns.  1/sqrt(D) is already folded into the Q columns of wqkv/bqkv.
    qkv = jnp.dot(x, wqkv_ref[...],
                  preferred_element_type=jnp.float32) + bqkv_ref[...]

    # Static, 128-aligned lane slices of the fused projection.
    q = qkv[:, 0 * d_pad:1 * d_pad]
    k = qkv[:, 1 * d_pad:2 * d_pad]
    v = qkv[:, 2 * d_pad:3 * d_pad]

    # (rows, Dp) -> (block_b, S, Dp): free f32 view because _pick_block_b only
    # folds batches when S % 8 == 0 (otherwise block_b == 1).
    qb = q.reshape(block_b, seq_len, d_pad).astype(dot_dtype)
    kb = k.reshape(block_b, seq_len, d_pad).astype(dot_dtype)
    vb = v.reshape(block_b, seq_len, d_pad).astype(dot_dtype)

    # scores[b, i, j] = sum_d q[b, i, d] * k[b, j, d]  (no k.T materialization).
    scores = jax.lax.dot_general(
        qb, kb, dimension_numbers=(((2,), (2,)), ((0,), (0,))),
        preferred_element_type=jnp.float32)               # (block_b, S, S) f32

    m = jnp.max(scores, axis=-1, keepdims=True)
    e = jnp.exp(scores - m)
    denom = jnp.sum(e, axis=-1, keepdims=True)            # (block_b, S, 1) f32

    # Unnormalized PV matmul, then normalize the (S, Dp) result (cheaper than
    # scaling the (S, S) probabilities whenever S > D).  Exact reciprocal:
    # approx=True exceeded the 1e-3 accuracy budget in the harness.
    attended = jax.lax.dot_general(
        e.astype(dot_dtype), vb,
        dimension_numbers=(((2,), (1,)), ((0,), (0,))),
        preferred_element_type=jnp.float32)               # (block_b, S, Dp) f32
    attended = attended * pl.reciprocal(denom, approx=False)

    o_ref[...] = attended.reshape(block_b * seq_len, d_pad).astype(o_ref.dtype)


def _pick_block_b(batch, seq_len, target_rows=512):
    """Pick the batch-fold factor for one grid step.

    Largest divisor of `batch` such that:
      * the grid keeps >= 2 steps when batch > 1 (shards the "parallel" axis
        across v7x's two TensorCores; no effect on v5e/v6e),
      * the row slab block_b*seq_len stays near `target_rows`,
      * batches are only folded when seq_len % 8 == 0, so the in-kernel
        (rows, Dp) -> (block_b, S, Dp) f32 reshape is a free view.
    """
    best = 1
    for cand in range(1, batch + 1):
        if batch % cand:
            continue
        if batch > 1 and batch // cand < 2:
            continue                        # leave work for the 2nd TensorCore
        if cand > 1:
            rows = cand * seq_len
            if rows > target_rows or seq_len % 8 != 0:
                continue
        best = cand
    return best


def _vmem_limit_bytes(rows, d_pad, block_b, seq_len, dot_dtype, out_dtype):
    """Rough per-step VMEM budget (double-buffered x/out, single-buffered
    weights, f32 intermediates) with 2x margin, clamped to [32 MiB, 64 MiB].
    64 MiB is v7x's physical VMEM; v5e/v6e have 128 MiB so the clamp is
    conservative there."""
    dsz = jnp.dtype(dot_dtype).itemsize
    osz = jnp.dtype(out_dtype).itemsize
    est = 2 * rows * d_pad * (dsz + osz)                  # pipelined x + out
    est += d_pad * 3 * d_pad * dsz + 3 * d_pad * 4        # resident wqkv + bias
    est += rows * 3 * d_pad * 4                           # fused qkv (f32)
    est += 3 * rows * d_pad * dsz                         # q/k/v operand casts
    est += 3 * block_b * seq_len * seq_len * 4            # scores / e temporaries
    est += rows * d_pad * 4                               # attended (f32)
    est *= 2                                              # compiler slack
    return int(min(max(est, 32 * 1024 * 1024), 64 * 1024 * 1024))


def self_attention(x, wq, bq, wk, bk, wv, bv, *,
                   operand_dtype=jnp.bfloat16, block_b=None):
    """x: (B, S, D); wq/wk/wv: (D, D) stored as (out, in); b*: (D,).

    Returns (B, S, D) in x.dtype.

    operand_dtype: dtype of the MXU matmul operands.  bf16 is the default on
      every generation (the MXU is bf16-native on v5e/v6e/v7x and it halves
      the x-block HBM traffic); accumulation and softmax always stay float32.
      Pass jnp.float32 (or None) for bit-accurate results.
    """
    B, S, D = x.shape
    dot_dtype = x.dtype if operand_dtype is None else operand_dtype

    # Lane-dense feature dim: pad D to a multiple of 128.  Padded weight rows
    # and bias entries are zero, so padded q/k columns are exactly zero and do
    # not perturb the scores; padded v columns are zero and sliced off below.
    d_pad = ((D + 127) // 128) * 128

    if block_b is None:
        block_b = _pick_block_b(B, S)
    assert B % block_b == 0
    rows = block_b * S

    scale = 1.0 / math.sqrt(float(D))     # true feature_dim, not the padded one

    # One-time constant prep on the host: transpose (nn.Linear stores (out,in)),
    # fold 1/sqrt(D) into the Q projection, zero-pad to Dp, fuse into a single
    # (Dp, 3*Dp) weight + (1, 3*Dp) bias, cast MXU operands.
    def _prep_w(w, s):
        wt = w.T.astype(jnp.float32) * s
        return jnp.pad(wt, ((0, d_pad - D), (0, d_pad - D)))

    def _prep_b(b, s):
        return jnp.pad(b.astype(jnp.float32) * s, (0, d_pad - D))

    wqkv = jnp.concatenate(
        [_prep_w(wq, scale), _prep_w(wk, 1.0), _prep_w(wv, 1.0)],
        axis=1).astype(dot_dtype)                                   # (Dp, 3*Dp)
    bqkv = jnp.concatenate(
        [_prep_b(bq, scale), _prep_b(bk, 1.0), _prep_b(bv, 1.0)]
    ).reshape(1, 3 * d_pad).astype(jnp.float32)                     # (1, 3*Dp)

    xr = x.reshape(B * S, D)
    if d_pad != D:
        xr = jnp.pad(xr, ((0, 0), (0, d_pad - D)))
    xr = xr.astype(dot_dtype)                                       # (B*S, Dp)

    io_spec = pl.BlockSpec((rows, d_pad), lambda i: (i, 0))
    # Constant-index blocks never change across the grid: single-buffer them
    # (v7x feedback — halves their VMEM footprint at large D).
    w_spec = pl.BlockSpec((d_pad, 3 * d_pad), lambda i: (0, 0),
                          pipeline_mode=pl.Buffered(1))
    b_spec = pl.BlockSpec((1, 3 * d_pad), lambda i: (0, 0),
                          pipeline_mode=pl.Buffered(1))

    kernel = functools.partial(
        _self_attention_kernel,
        block_b=block_b, seq_len=S, d_pad=d_pad, dot_dtype=dot_dtype)

    out = pl.pallas_call(
        kernel,
        out_shape=jax.ShapeDtypeStruct((B * S, d_pad), x.dtype),
        grid_spec=pltpu.PrefetchScalarGridSpec(
            num_scalar_prefetch=0,
            grid=(B // block_b,),
            in_specs=[io_spec, w_spec, b_spec],
            out_specs=io_spec,
        ),
        compiler_params=pltpu.CompilerParams(
            dimension_semantics=("parallel",),
            vmem_limit_bytes=_vmem_limit_bytes(
                rows, d_pad, block_b, S, dot_dtype, x.dtype)),
    )(xr, wqkv, bqkv)

    out = out.reshape(B, S, d_pad)
    return out[..., :D] if d_pad != D else out


def _reference(x, wq, bq, wk, bk, wv, bv):
    q = jnp.einsum("bsd,ed->bse", x, wq) + bq
    k = jnp.einsum("bsd,ed->bse", x, wk) + bk
    v = jnp.einsum("bsd,ed->bse", x, wv) + bv
    scores = jnp.einsum("bqe,bke->bqk", q, k) / math.sqrt(x.shape[-1])
    w = jax.nn.softmax(scores, axis=-1)
    return jnp.einsum("bqk,bke->bqe", w, v)


if __name__ == "__main__":
    B, S, D = 2, 8, 32   # batch, sequence, feature_dim
    key = jax.random.PRNGKey(0)
    kx, kq, kbq, kk, kbk, kv, kbv = jax.random.split(key, 7)

    x = jax.random.normal(kx, (B, S, D), dtype=jnp.float32)
    bound = 1.0 / math.sqrt(D)   # mimic nn.Linear's uniform init range
    wq = jax.random.uniform(kq, (D, D), minval=-bound, maxval=bound, dtype=jnp.float32)
    bq = jax.random.uniform(kbq, (D,), minval=-bound, maxval=bound, dtype=jnp.float32)
    wk = jax.random.uniform(kk, (D, D), minval=-bound, maxval=bound, dtype=jnp.float32)
    bk = jax.random.uniform(kbk, (D,), minval=-bound, maxval=bound, dtype=jnp.float32)
    wv = jax.random.uniform(kv, (D, D), minval=-bound, maxval=bound, dtype=jnp.float32)
    bv = jax.random.uniform(kbv, (D,), minval=-bound, maxval=bound, dtype=jnp.float32)

    ref = _reference(x, wq, bq, wk, bk, wv, bv)

    # Exact path: f32 MXU operands, f32 accumulation, exact softmax reciprocal.
    out_f32 = jax.block_until_ready(
        self_attention(x, wq, bq, wk, bk, wv, bv, operand_dtype=jnp.float32))
    assert out_f32.shape == (B, S, D)
    assert jnp.allclose(out_f32, ref, atol=1e-3, rtol=1e-3), "f32 kernel mismatch"

    # Default path: bf16 MXU operands (recommended on v5e/v6e/v7x), f32
    # accumulation and f32 softmax.
    out_bf16 = jax.block_until_ready(self_attention(x, wq, bq, wk, bk, wv, bv))
    assert out_bf16.shape == (B, S, D)
    assert jnp.allclose(out_bf16, ref, atol=5e-2, rtol=5e-2), "bf16 kernel mismatch"

    print("KERNEL_OK")
</pallas_src>

<mosaic_0001>
module attributes {stable_mosaic.version = 11 : i64} {
  func.func @_self_attention_kernel(%arg0: i32, %arg1: memref<8x128xf32, #tpu.memory_space<vmem>>, %arg2: memref<128x384xf32, #tpu.memory_space<vmem>>, %arg3: memref<1x384xf32, #tpu.memory_space<vmem>>, %arg4: memref<8x128xf32, #tpu.memory_space<vmem>>) attributes {dimension_semantics = [#tpu.dimension_semantics<parallel>], iteration_bounds = array<i64: 2>, scalar_prefetch = 0 : i64, scratch_operands = 0 : i64, tpu.core_type = #tpu.core_type<tc>, window_params = [{transform_indices = @transform_0, window_bounds = array<i64: 8, 128>}, {pipeline_mode = #tpu.pipeline_mode<synchronous>, transform_indices = @transform_1, window_bounds = array<i64: 128, 384>}, {pipeline_mode = #tpu.pipeline_mode<synchronous>, transform_indices = @transform_2, window_bounds = array<i64: 1, 384>}, {transform_indices = @transform_3, window_bounds = array<i64: 8, 128>}]} {
    %c0 = arith.constant 0 : index
    %c0_0 = arith.constant 0 : index
    %0 = vector.load %arg1[%c0, %c0_0] : memref<8x128xf32, #tpu.memory_space<vmem>>, vector<8x128xf32>
    %c0_1 = arith.constant 0 : index
    %c0_2 = arith.constant 0 : index
    %1 = vector.load %arg2[%c0_1, %c0_2] : memref<128x384xf32, #tpu.memory_space<vmem>>, vector<128x384xf32>
    %cst = arith.constant dense<0.000000e+00> : vector<8x384xf32>
    %2 = tpu.matmul %0, %1, %cst {dimension_numbers = #tpu.dot_dimension_numbers<[1], [0], [0], [1], [0, 0, 1, 1], [], []>} : vector<8x128xf32>, vector<128x384xf32>, vector<8x384xf32> -> vector<8x384xf32>
    %c0_3 = arith.constant 0 : index
    %c0_4 = arith.constant 0 : index
    %3 = vector.load %arg3[%c0_3, %c0_4] : memref<1x384xf32, #tpu.memory_space<vmem>>, vector<1x384xf32>
    %4 = vector.broadcast %3 : vector<1x384xf32> to vector<8x384xf32>
    %5 = arith.addf %2, %4 : vector<8x384xf32>
    %6 = vector.extract_strided_slice %5 {offsets = [0, 0], sizes = [8, 128], strides = [1, 1]} : vector<8x384xf32> to vector<8x128xf32>
    %7 = vector.extract_strided_slice %5 {offsets = [0, 128], sizes = [8, 128], strides = [1, 1]} : vector<8x384xf32> to vector<8x128xf32>
    %8 = vector.extract_strided_slice %5 {offsets = [0, 256], sizes = [8, 128], strides = [1, 1]} : vector<8x384xf32> to vector<8x128xf32>
    %9 = vector.shape_cast %6 : vector<8x128xf32> to vector<1x8x128xf32>
    %10 = vector.shape_cast %7 : vector<8x128xf32> to vector<1x8x128xf32>
    %11 = vector.shape_cast %8 : vector<8x128xf32> to vector<1x8x128xf32>
    %cst_5 = arith.constant dense<0.000000e+00> : vector<1x8x8xf32>
    %12 = tpu.matmul %9, %10, %cst_5 {dimension_numbers = #tpu.dot_dimension_numbers<[2], [2], [1], [1], [0, 0, 0, 1, 1, 1], [0], [0]>} : vector<1x8x128xf32>, vector<1x8x128xf32>, vector<1x8x8xf32> -> vector<1x8x8xf32>
    %cst_6 = arith.constant dense<0xFF800000> : vector<1x8xf32>
    %13 = vector.multi_reduction <maximumf>, %12, %cst_6 [2] : vector<1x8x8xf32> to vector<1x8xf32>
    %14 = vector.shape_cast %13 : vector<1x8xf32> to vector<1x8x1xf32>
    %15 = vector.broadcast %14 : vector<1x8x1xf32> to vector<1x8x8xf32>
    %16 = arith.subf %12, %15 : vector<1x8x8xf32>
    %17 = math.exp %16 : vector<1x8x8xf32>
    %cst_7 = arith.constant dense<0.000000e+00> : vector<1x8xf32>
    %18 = vector.multi_reduction <add>, %17, %cst_7 [2] : vector<1x8x8xf32> to vector<1x8xf32>
    %19 = vector.shape_cast %18 : vector<1x8xf32> to vector<1x8x1xf32>
    %cst_8 = arith.constant dense<0.000000e+00> : vector<1x8x128xf32>
    %20 = tpu.matmul %17, %11, %cst_8 {dimension_numbers = #tpu.dot_dimension_numbers<[2], [1], [1], [2], [0, 0, 0, 1, 1, 2], [0], [0]>} : vector<1x8x8xf32>, vector<1x8x128xf32>, vector<1x8x128xf32> -> vector<1x8x128xf32>
    %21 = tpu.reciprocal %19 : vector<1x8x1xf32> -> vector<1x8x1xf32>
    %22 = vector.broadcast %21 : vector<1x8x1xf32> to vector<1x8x128xf32>
    %23 = arith.mulf %20, %22 : vector<1x8x128xf32>
    %24 = vector.shape_cast %23 : vector<1x8x128xf32> to vector<8x128xf32>
    %c0_9 = arith.constant 0 : index
    %c0_10 = arith.constant 0 : index
    %25 = vector.load %arg4[%c0_9, %c0_10] : memref<8x128xf32, #tpu.memory_space<vmem>>, vector<8x128xf32>
    tpu.vector_store %arg4[%c0_9, %c0_10], %24 {strides = array<i32>} : memref<8x128xf32, #tpu.memory_space<vmem>>, vector<8x128xf32>,
    return
  }
  func.func @transform_0(%arg0: i32) -> (i32, i32) {
    %c0_i32 = arith.constant 0 : i32
    %c0_i32_0 = arith.constant 0 : i32
    return %arg0, %c0_i32 : i32, i32
  }
  func.func @transform_1(%arg0: i32) -> (i32, i32) {
    %c0_i32 = arith.constant 0 : i32
    %c0_i32_0 = arith.constant 0 : i32
    %c0_i32_1 = arith.constant 0 : i32
    return %c0_i32, %c0_i32_0 : i32, i32
  }
  func.func @transform_2(%arg0: i32) -> (i32, i32) {
    %c0_i32 = arith.constant 0 : i32
    %c0_i32_0 = arith.constant 0 : i32
    %c0_i32_1 = arith.constant 0 : i32
    return %c0_i32, %c0_i32_0 : i32, i32
  }
  func.func @transform_3(%arg0: i32) -> (i32, i32) {
    %c0_i32 = arith.constant 0 : i32
    %c0_i32_0 = arith.constant 0 : i32
    return %arg0, %c0_i32 : i32, i32
  }
}

</mosaic_0001>

<bundles_post_ra>
// kernel: tpu_custom_call.1
= control target key start
LH: loop header
LB: loop body
LE: loop exit
PB: predicated region body
PF: predicated region fallthrough
CT: control target
= control target key end

     0   :  { %8 = vsyncpa [#allocation3], 0  ;;  %s1153_s0 = inlined_call_operand.hbm [shape: f32[16,128], index: 0, kind: input, shape index: {}]   ;;  %s1154_s1 = inlined_call_operand.hbm [shape: f32[128,384], index: 1, kind: input, shape index: {}]   ;;  %s1155_s2 = inlined_call_operand.vmem [shape: f32[1,384], index: 2, kind: input, shape index: {}]   ;;  %s1156_s3 = inlined_call_operand.hbm [shape: f32[16,128], index: 3, kind: output, shape index: {}]  }
   0x1   :  { %10 = vsyncpa [#allocation3 + $0x1], 0 }
   0x2   :  { %11 = vsyncpa [#allocation6], 0 }
   0x3   :  { %12 = vsyncpa [#allocation4], 0 }
   0x4   :  { %14 = vsyncpa [#allocation4 + $0x1], 0  ;;  %s955_s12 = smov 0   ;;  %s957_s13 = smov 0  }
   0x5   :  { %s959_s14 = smov 0   ;;  %s961_s15 = smov 0  }
   0x6 LB: > { %s976_s16 = sadd.s32 4294967295, %s926_s15   ;;  %s658_s17 = sadd.s32 4294967294, %s926_s15   ;;  %s926_s15 = sphi %s961_s15, %s1178_s15   ;;  %s922_s14 = sphi %s959_s14, %s1177_s14   ;;  %s918_s13 = sphi %s957_s13, %s1176_s13   ;;  %s914_s12 = sphi %s955_s12, %s1175_s12  }
   0x7   : > { %p40_p0 = scmp.ne.s32.totalorder %s918_s13, %s914_s12  ;;  %p1157_p1 = scmp.eq.s32.totalorder %s976_s16, 0 }
   0x8   : > { %p112_p3 = scmp.eq.s32.totalorder %s658_s17, 1  ;;  %p659_p5 = scmp.ge.s32.totalorder %s926_s15, 1 }
   0x9   : > { %p985_p4 = por %p1157_p1, %p40_p0  ;;  %p119_p7 = scmp.lt.s32.totalorder %s926_s15, 3 }
   0xa   : > { %p990_p6 = por %p112_p3, %p40_p0  ;;  %s928_s21 = smov [#allocation5]  }
   0xb   : > { %s1161_s18 = scalar_select %p985_p4, 1, 0 }
   0xc   : > { %s1162_s19 = scalar_select %p990_p6, 1, 0 }
   0xd   : > { %p995_p8 = pnand %p659_p5, %p119_p7  ;;  %s131_s22 = sshll.u32 %s928_s21, 4  ;;  %s132_s22 = int_to_ptr.vmem [resolvable:$true] %s131_s22 }
   0xe   : > { %s1009_s24 = sadd.s32 1, %s926_s15   ;;  %s27_s25 = sadd.s32 1, %s922_s14 }
   0xf   : > { %s1163_s20 = scalar_select %p995_p8, 1, 0 }
  0x10   : > { %p747_p9 = pneg %p995_p8  ;;  %s24_s26 = ssub.s32 %s926_s15, %s1009_s24 }
  0x11   : > { %s815_s27 = scalar_lea.vmem %s132_s22, 6144  ;;  %p823_p5 = scmp.lt.s32.totalorder %s132_s22, %s132_s22 }
  0x12   : > { %p1004_p11 = pnand %p747_p9, %p1157_p1  ;;  %p816_p13 = scmp.ne.s32.totalorder %s132_s22, %s815_s27 }
  0x13   : > { %p824_p7 = scmp.lt.s32.totalorder %s815_s27, %s815_s27 }
  0x14   : > { %p806_p12 = pneg %p1004_p11 }
  0x15   : > { %p825_p10 = por %p824_p7, %p823_p5 }
  0x16   : > { %p818_p0 = pnand %p816_p13, %p806_p12 }
  0x18   : > { %p819_p3 = pneg %p818_p0 }
  0x1a   : > { %p826_p2 = pnand %p825_p10, %p819_p3 }
  0x1c   : > { %829 = shalt.err (!%p826_p2)
}
  0x1d   : > { %s929_s28 = smov 384   ;;  %s930_s29 = smov 24  }
  0x1e   : > { %750 = dma.hbm_to_vmem [thread:$0]  (!%p1004_p11), %s1154_s1, 6144, %s132_s22, [#allocation6], %s929_s28, %s929_s28, %s930_s29  }
  0x1f   : > { %p25_p9 = scmp.eq.s32.totalorder %s24_s26, 0  ;;  %p34_p12 = scmp.ne.s32.totalorder %s922_s14, %s918_s13 }
  0x20   : > { %p35_p10 = scmp.eq.s32.totalorder %s926_s15, 0  ;;  %p760_p2 = scmp.lt.s32.totalorder %s926_s15, 2 }
  0x21   : > { %s1026_s5 = scalar_select %p25_p9, %s922_s14, %s27_s25  }
  0x22   : > { %p36_p13 = por %p35_p10, %p34_p12  ;;  %p1165_p0 = scmp.eq.s32.totalorder %s976_s16, 1 }
  0x23   : > { %s148_s7 = sand.u32 1, %s922_s14   ;;  %s663_s8 = sshll.u32 %s926_s15, 7 }
  0x24   : > { %p1030_p3 = por %p1165_p0, %p34_p12  ;;  %s662_s9 = sshll.u32 %s148_s7, 3 }
  0x25   : > { %s1039_s17 = scalar_lea.hbm %s1153_s0, %s663_s8  ;;  %s152_s21 = scalar_lea.vmem [#allocation2], %s662_s9 }
  0x26   : > { %s1166_s6 = scalar_select %p1030_p3, 1, 0 }
  0x27   : > { %s159_s22 = sshll.u32 %s152_s21, 4  ;;  %p1041_p11 = pnand %p760_p2, %p36_p13  ;;  %s160_s22 = int_to_ptr.vmem [resolvable:$true] %s159_s22 }
  0x28   : > { %s149_s25 = scalar_lea.sflag [#allocation3], %s148_s7  ;;  %s830_s26 = scalar_lea.hbm %s1039_s17, 128 }
  0x29   : > { %p831_p5 = scmp.ne.s32.totalorder %s1039_s17, %s830_s26  ;;  %p832_p7 = pneg %p1041_p11 }
  0x2a   : > { %s835_s29 = scalar_lea.hbm %s1153_s0, 256  ;;  %p836_p10 = scmp.lt.s32.totalorder %s1039_s17, %s1153_s0 }
  0x2b   : > { %p833_p9 = pnand %p832_p7, %p831_p5  ;;  %p837_p2 = scmp.lt.s32.totalorder %s835_s29, %s830_s26 }
  0x2d   : > { %p834_p12 = pneg %p833_p9  ;;  %p838_p13 = por %p837_p2, %p836_p10 }
  0x2f   : > { %p839_p0 = pnand %p838_p13, %p834_p12 }
  0x31   : > { %842 = shalt.err (!%p839_p0)
}
  0x32   : > { %s843_s8 = scalar_lea.vmem %s160_s22, 128  ;;  %s931_s7 = smov [#allocation2]  }
  0x33   : > { %p844_p1 = scmp.ne.s32.totalorder %s160_s22, %s843_s8  ;;  %s848_s9 = sshll.u32 %s931_s7, 4  ;;  %s849_s9 = int_to_ptr.vmem [resolvable:$false] %s848_s9 }
  0x34   : > { %s850_s10 = scalar_lea.vmem %s849_s9, 256  ;;  %p851_p5 = scmp.lt.s32.totalorder %s160_s22, %s849_s9 }
  0x35   : > { %p846_p6 = pnand %p844_p1, %p832_p7  ;;  %p852_p9 = scmp.lt.s32.totalorder %s850_s10, %s843_s8 }
  0x37   : > { %p847_p3 = pneg %p846_p6  ;;  %p853_p4 = por %p852_p9, %p851_p5 }
  0x39   : > { %p854_p8 = pnand %p853_p4, %p847_p3 }
  0x3b   : > { %857 = shalt.err (!%p854_p8)
}
  0x3c   : > { %754 = dma.hbm_to_vmem [thread:$0]  (!%p1041_p11), %s1039_s17, 128, %s160_s22, %s149_s25  }
  0x3d   : > { %p1168_p12 = scmp.ne.s32.totalorder %s1163_s20, 0 }
  0x3e   : > { %s1062_s11 = sand.u32 (!%p1168_p12), 1, %s918_s13   ;;  %p1169_p1 = scmp.ne.s32.totalorder (!%p1168_p12), %s1161_s18, 0 }
  0x3f   : > { %168 = sbr.rel (%p1168_p12) target bundleno = 864 (0x360), region = 32  ;;  %s665_s21 = sshll.u32 (!%p1168_p12), %s1062_s11, 3 }
  0x40   : > { %s171_s26 = scalar_lea.sflag (!%p1168_p12), [#allocation3], %s1062_s11  ;;  %s1068_s27 = scalar_lea.vmem (!%p1168_p12), [#allocation2], %s665_s21 }
  0x44   : > { %901 = dma.done.wait (%p1169_p1), %s171_s26, 128  }
  0x45   : > { %903 = vsyncadd (%p1169_p1), %s171_s26, 4294967168  ;;  %p1170_p4 = scmp.eq.s32.totalorder %s976_s16, 0 }
  0x47   : > { %905 = dma.done.wait (%p1170_p4), [#allocation6], 6144   ;;  %p1171_p6 = pmov %p1170_p4 }
  0x48   : > { %v932_v0 = vmov 0.0   ;;  %v248_v1 = vld [vmem:[#allocation5 + $0x170] sm:$0xff]  ;;  %v247_v2 = vld [vmem:[#allocation5 + $0x168] sm:$0xff]  ;;  %v245_v3 = vld [vmem:[#allocation5 + $0x158] sm:$0xff]  ;;  %vm933_vm0 = vmmov 0   ;;  %v252_v50 = vlaneseq  ;;  %vm478_vm1 = vcmask 64512  }
  0x49   : > { %907 = vsyncadd (%p1171_p6), [#allocation6], 4294961152  ;;  %331 = vmatprep.mubr.f32.mxu0 %v932_v0  ;;  %694 = vmatprep.subr.mxu1 %v932_v0  ;;  %v244_v4 = vld [vmem:[#allocation5 + $0x150] sm:$0xff]  ;;  %v242_v5 = vld [vmem:[#allocation5 + $0x140] sm:$0xff]  ;;  %s670_s17 = sshll.u32 %s976_s16, 7  ;;  %s200_s22 = scalar_lea.vmem [#allocation7], %s665_s21 }
  0x4a   : > { %267 = vmatprep.subr.mxu0 %v248_v1  ;;  %v241_v6 = vld [vmem:[#allocation5 + $0x138] sm:$0xff]  ;;  %v239_v7 = vld [vmem:[#allocation5 + $0x128] sm:$0xff]  ;;  %v238_v8 = vld [vmem:[#allocation5 + $0x120] sm:$0xff]  ;;  %726 = vmatprep.mubr.msk.f32.mxu1 %vm933_vm0, %v932_v0  ;;  %v253_v51 = vshrl.u32 %v252_v50, 7  ;;  %s578_s23 = sshll.u32 %s200_s22, 4  ;;  %s1116_s29 = scalar_lea.hbm %s1156_s3, %s670_s17  ;;  %s579_s23 = int_to_ptr.vmem [resolvable:$true] %s578_s23 }
  0x4b   : > { %268 = vmatpush1.msra.mxu0 %v247_v2  ;;  %v236_v9 = vld [vmem:[#allocation5 + $0x110] sm:$0xff]  ;;  %v235_v10 = vld [vmem:[#allocation5 + $0x108] sm:$0xff]  ;;  %v233_v11 = vld [vmem:[#allocation5 + $0xf8] sm:$0xff]  ;;  %s565_s30 = scalar_lea.sflag [#allocation4], %s1062_s11  ;;  %s858_s4 = scalar_lea.vmem %s579_s23, 128 }
  0x4c   : > { %269 = vmatprep.subr.mxu0 %v245_v3  ;;  %v232_v12 = vld [vmem:[#allocation5 + $0xf0] sm:$0xff]  ;;  %v230_v13 = vld [vmem:[#allocation5 + $0xe0] sm:$0xff]  ;;  %v229_v14 = vld [vmem:[#allocation5 + $0xd8] sm:$0xff]  ;;  %v258_v52 = vsub.s32 1, %v253_v51  ;;  %v254_v54 = vsub.s32 0, %v253_v51  ;;  %p859_p8 = scmp.ne.s32.totalorder %s579_s23, %s858_s4  ;;  %p1172_p3 = scmp.ne.s32.totalorder %s1166_s6, 0 }
  0x4d   : > { %270 = vmatpush1.msra.mxu0 %v244_v4  ;;  %v227_v15 = vld [vmem:[#allocation5 + $0xc8] sm:$0xff]  ;;  %v226_v16 = vld [vmem:[#allocation5 + $0xc0] sm:$0xff]  ;;  %v224_v17 = vld [vmem:[#allocation5 + $0xb0] sm:$0xff]  ;;  %s934_s16 = smov [#allocation7]  }
  0x4e   : > { %271 = vmatprep.subr.mxu0 %v242_v5  ;;  %v223_v18 = vld [vmem:[#allocation5 + $0xa8] sm:$0xff]  ;;  %v221_v19 = vld [vmem:[#allocation5 + $0x98] sm:$0xff]  ;;  %v220_v20 = vld [vmem:[#allocation5 + $0x90] sm:$0xff]  ;;  %p860_p11 = pnand %p859_p8, %p1172_p3  ;;  %s862_s8 = sshll.u32 %s934_s16, 4  ;;  %s863_s8 = int_to_ptr.vmem [resolvable:$false] %s862_s8 }
  0x4f   : > { %272 = vmatpush1.msra.mxu0 %v241_v6  ;;  %v218_v21 = vld [vmem:[#allocation5 + $0x80] sm:$0xff]  ;;  %v217_v22 = vld [vmem:[#allocation5 + $0x78] sm:$0xff]  ;;  %v215_v23 = vld [vmem:[#allocation5 + $0x68] sm:$0xff]  ;;  %s864_s7 = scalar_lea.vmem %s863_s8, 256  ;;  %p865_p10 = scmp.lt.s32.totalorder %s579_s23, %s863_s8 }
  0x50   : > { %273 = vmatprep.subr.mxu0 %v239_v7  ;;  %v214_v24 = vld [vmem:[#allocation5 + $0x60] sm:$0xff]  ;;  %v212_v25 = vld [vmem:[#allocation5 + $0x50] sm:$0xff]  ;;  %v211_v26 = vld [vmem:[#allocation5 + $0x48] sm:$0xff]  ;;  %p861_p7 = pneg %p860_p11  ;;  %p866_p2 = scmp.lt.s32.totalorder %s864_s7, %s858_s4 }
  0x51   : > { %274 = vmatpush1.msra.mxu0 %v238_v8  ;;  %v209_v27 = vld [vmem:[#allocation5 + $0x38] sm:$0xff]  ;;  %v208_v28 = vld [vmem:[#allocation5 + $0x30] sm:$0xff]  ;;  %v206_v29 = vld [vmem:[#allocation5 + $0x20] sm:$0xff] }
  0x52   : > { %275 = vmatprep.subr.mxu0 %v236_v9  ;;  %v205_v30 = vld [vmem:[#allocation5 + $0x18] sm:$0xff]  ;;  %v203_v31 = vld [vmem:[#allocation5 + $0x8] sm:$0xff]  ;;  %v202_v32 = vld [vmem:[#allocation5] sm:$0xff]  ;;  %p867_p13 = por %p866_p2, %p865_p10 }
  0x53   : > { %276 = vmatpush1.msra.mxu0 %v235_v10  ;;  %v201_v33 = vld [vmem:[%s1068_s27] sm:$0xff]  ;;  %v246_v35 = vld [vmem:[#allocation5 + $0x160] sm:$0xff]  ;;  %v243_v36 = vld [vmem:[#allocation5 + $0x148] sm:$0xff] }
  0x54   : > { %277 = vmatprep.subr.mxu0 %v233_v11  ;;  %v249_v34 = vld [vmem:[#allocation5 + $0x178] sm:$0xff]  ;;  %v240_v37 = vld [vmem:[#allocation5 + $0x130] sm:$0xff]  ;;  %v234_v39 = vld [vmem:[#allocation5 + $0x100] sm:$0xff]  ;;  %p868_p0 = pnand %p867_p13, %p861_p7 }
  0x55   : > { %278 = vmatpush1.msra.mxu0 %v232_v12  ;;  %695 = vmatpush3.msra.mxu1 %v249_v34  ;;  %v237_v38 = vld [vmem:[#allocation5 + $0x118] sm:$0xff]  ;;  %v231_v40 = vld [vmem:[#allocation5 + $0xe8] sm:$0xff]  ;;  %v228_v41 = vld [vmem:[#allocation5 + $0xd0] sm:$0xff] }
  0x56   : > { %279 = vmatprep.subr.mxu0 %v230_v13  ;;  %696 = vmatprep.subr.mxu1 %v932_v0  ;;  %v225_v42 = vld [vmem:[#allocation5 + $0xb8] sm:$0xff]  ;;  %v222_v43 = vld [vmem:[#allocation5 + $0xa0] sm:$0xff]  ;;  %v219_v44 = vld [vmem:[#allocation5 + $0x88] sm:$0xff] }
  0x57   : > { %280 = vmatpush1.msra.mxu0 %v229_v14  ;;  %697 = vmatpush3.msra.mxu1 %v246_v35  ;;  %v216_v45 = vld [vmem:[#allocation5 + $0x70] sm:$0xff]  ;;  %v213_v46 = vld [vmem:[#allocation5 + $0x58] sm:$0xff]  ;;  %v210_v47 = vld [vmem:[#allocation5 + $0x40] sm:$0xff] }
  0x58   : > { %281 = vmatprep.subr.mxu0 %v227_v15  ;;  %698 = vmatprep.subr.mxu1 %v932_v0  ;;  %v207_v48 = vld [vmem:[#allocation5 + $0x28] sm:$0xff]  ;;  %v204_v49 = vld [vmem:[#allocation5 + $0x10] sm:$0xff] }
  0x59   : > { %282 = vmatpush1.msra.mxu0 %v226_v16  ;;  %699 = vmatpush3.msra.mxu1 %v243_v36  ;;  %v250_v53 = vld [vmem:[%s1155_s2] sm:$0x7] }
  0x5a   : > { %283 = vmatprep.subr.mxu0 %v224_v17  ;;  %700 = vmatprep.subr.mxu1 %v932_v0  ;;  %v259_v55 = vrot.slane %v250_v53, %v258_v52  ;;  %v255_v57 = vrot.slane %v250_v53, %v254_v54 }
  0x5b   : > { %284 = vmatpush1.msra.mxu0 %v223_v18  ;;  %701 = vmatpush3.msra.mxu1 %v240_v37 }
  0x5c   : > { %285 = vmatprep.subr.mxu0 %v221_v19  ;;  %702 = vmatprep.subr.mxu1 %v932_v0 }
  0x5d   : > { %286 = vmatpush1.msra.mxu0 %v220_v20  ;;  %703 = vmatpush3.msra.mxu1 %v237_v38 }
  0x5e   : > { %287 = vmatprep.subr.mxu0 %v218_v21  ;;  %704 = vmatprep.subr.mxu1 %v932_v0 }
  0x5f   : > { %288 = vmatpush1.msra.mxu0 %v217_v22  ;;  %705 = vmatpush3.msra.mxu1 %v234_v39 }
  0x60   : > { %289 = vmatprep.subr.mxu0 %v215_v23  ;;  %706 = vmatprep.subr.mxu1 %v932_v0 }
  0x61   : > { %290 = vmatpush1.msra.mxu0 %v214_v24  ;;  %707 = vmatpush3.msra.mxu1 %v231_v40 }
  0x62   : > { %291 = vmatprep.subr.mxu0 %v212_v25  ;;  %708 = vmatprep.subr.mxu1 %v932_v0 }
  0x63   : > { %292 = vmatpush1.msra.mxu0 %v211_v26  ;;  %709 = vmatpush3.msra.mxu1 %v228_v41 }
  0x64   : > { %293 = vmatprep.subr.mxu0 %v209_v27  ;;  %710 = vmatprep.subr.mxu1 %v932_v0 }
  0x65   : > { %294 = vmatpush1.msra.mxu0 %v208_v28  ;;  %711 = vmatpush3.msra.mxu1 %v225_v42 }
  0x66   : > { %295 = vmatprep.subr.mxu0 %v206_v29  ;;  %712 = vmatprep.subr.mxu1 %v932_v0 }
  0x67   : > { %296 = vmatpush1.msra.mxu0 %v205_v30  ;;  %713 = vmatpush3.msra.mxu1 %v222_v43 }
  0x68   : > { %297 = vmatprep.subr.mxu0 %v203_v31  ;;  %714 = vmatprep.subr.mxu1 %v932_v0 }
  0x69   : > { %298 = vmatpush1.msra.mxu0 %v202_v32  ;;  %715 = vmatpush3.msra.mxu1 %v219_v44 }
  0x6a   : > { %332 = vmatmul.mubr.f32.vlgmr.msra.gmra.mxu0 %v201_v33  ;;  %729 = vmatprep.subr.mxu0 %v932_v0 }
  0x6b   : > { %731 = vmatprep.mubr.msk.f32.mxu0 %vm933_vm0, %v932_v0  ;;  %716 = vmatprep.subr.mxu1 %v932_v0 }
  0x6c   : > { %717 = vmatpush3.msra.mxu1 %v216_v45 }
  0x6d   : > { %718 = vmatprep.subr.mxu1 %v932_v0 }
  0x6e   : > { %719 = vmatpush3.msra.mxu1 %v213_v46 }
  0x6f   : > { %720 = vmatprep.subr.mxu1 %v932_v0 }
  0x70   : > { %721 = vmatpush3.msra.mxu1 %v210_v47 }
  0x71   : > { %722 = vmatprep.subr.mxu1 %v932_v0 }
  0x72   : > { %723 = vmatpush3.msra.mxu1 %v207_v48 }
  0x73   : > { %724 = vmatprep.subr.mxu1 %v932_v0 }
  0x74   : > { %725 = vmatpush3.msra.mxu1 %v204_v49 }
  0x75   : > { %727 = vmatmul.mubr.f32.vlgmr.msra.gmra.mxu1 %v201_v33  ;;  %734 = vmatprep.subr.mxu1 %v932_v0 }
  0x76   : > { %736 = vmatprep.mubr.msk.f32.mxu1 %vm933_vm0, %v932_v0  ;;  %v262_v0 = vsub.s32 2, %v253_v51 }
  0x78   : > { %v263_v2 = vrot.slane %v250_v53, %v262_v0 }
 0x12a   : > { %v333_v56 = vpop.f32.mrf.mxu0 }
 0x12b   : > { %v334_v60 = vadd.f32 %v333_v56, %v255_v57 }
 0x12c   : > { %v335_v58 = vpop.f32.mrf.mxu0 }
 0x12d   : > { %v336_v59 = vadd.f32 %v335_v58, %v259_v55 }
 0x12f   : > { %730 = vmatpush3.xpose.msra.mxu0 %v336_v59 }
 0x132   : > { %732 = vmatmul.mubr.f32.vlgmr.msra.gmra.mxu0 %v334_v60 }
 0x135   : > { %v404_v1 = vpop.f32.mrf.mxu1 }
 0x136   : > { %v405_v4 = vadd.f32 %v404_v1, %v263_v2 }
 0x137   : > { %v728_v3 = vpop.f32.mrf.mxu1 }
 0x138   : > { %735 = vmatpush3.msra.mxu1 %v405_v4 }
 0x1f2   : > { %v474_v61 = vpop.f32.mrf.mxu0 }
 0x1f3   : > { %v479_v62 = vsel %vm478_vm1, %v474_v61, -inf }
 0x1f4   : > { %480 = vmax.xlane.f32.xlu0 %v479_v62  ;;  %v733_v63 = vpop.f32.mrf.mxu0 }
 0x27d   : > { %v481_v5 = vpop.xlane.xlu0 %480 }
 0x27e   : > { %v482_v6 = vsub.f32 %v474_v61, %v481_v5 }
 0x280   : > { %v483_v7 = vmul.f32 1.442695, %v482_v6 }
 0x282   : > { %800 = vpow2.f32 %v483_v7 }
 0x28f   : > { %v801_v8 = vpop.eup %800 }
 0x290   : > { %737 = vmatmul.mubr.msk.f32.vlgmr.msra.gmra.mxu1 %vm478_vm1, %v801_v8  ;;  %v485_v9 = vsel %vm478_vm1, %v801_v8, 0.0 }
 0x291   : > { %486 = vadd.xlane.f32.xlu0 %v485_v9 }
 0x31a   : > { %v487_v10 = vpop.xlane.xlu0 %486 }
 0x31b   : > { %802 = vrcp.f32 %v487_v10 }
 0x328   : > { %v803_v11 = vpop.eup %802 }
 0x350   : > { %v557_v12 = vpop.f32.mrf.mxu1 }
 0x351   : > { %v562_v13 = vmul.f32 %v803_v11, %v557_v12 }
 0x352   : > { %v738_v14 = vpop.f32.mrf.mxu1 }
 0x353   : > { %563 = vst [vmem:[%s200_s22] sm:$0xff] %v562_v13 }
 0x354   : > { %871 = shalt.err (!%p868_p0)
}
 0x355   : > { %s872_s9 = scalar_lea.hbm %s1116_s29, 128  ;;  %s876_s21 = scalar_lea.hbm %s1156_s3, 256 }
 0x356   : > { %p873_p5 = scmp.ne.s32.totalorder %s1116_s29, %s872_s9  ;;  %p877_p1 = scmp.lt.s32.totalorder %s1116_s29, %s1156_s3 }
 0x357   : > { %p878_p4 = scmp.lt.s32.totalorder %s876_s21, %s872_s9 }
 0x358   : > { %p874_p9 = pnand %p873_p5, %p1172_p3 }
 0x359   : > { %p879_p6 = por %p878_p4, %p877_p1 }
 0x35a   : > { %p875_p12 = pneg %p874_p9 }
 0x35c   : > { %p880_p8 = pnand %p879_p6, %p875_p12 }
 0x35e   : > { %883 = shalt.err (!%p880_p8)
}
 0x35f   : > { %745 = dma.vmem_to_hbm [thread:$0]  (%p1172_p3), %s579_s23, 128, %s1116_s29, %s565_s30  }
 0x360 PF: > { %s590_s18 = sand.u32 1, %s914_s12   ;;  %p1173_p11 = scmp.ne.s32.totalorder %s1162_s19, 0 }
 0x361   : > { %p1174_p7 = scmp.ge.s32.totalorder %s926_s15, 2  ;;  %s591_s20 = scalar_lea.sflag [#allocation4], %s590_s18 }
 0x363   : > { %p756_p10 = pnand %p1174_p7, %p1173_p11 }
 0x365   : > { %p757_p2 = pneg %p756_p10 }
 0x367   : > { %909 = dma.done.wait (%p757_p2), %s591_s20, 128  }
 0x368   : > { %911 = vsyncadd (%p757_p2), %s591_s20, 4294967168  ;;  %p17_p13 = scmp.ge.s32.totalorder %s1009_s24, 4   ;;  %s1175_s12 = smov %s918_s13 }
 0x369   : > { %s1176_s13 = smov %s922_s14  ;;  %s1177_s14 = smov %s1026_s5 }
 0x36a   : > { %s1178_s15 = smov %s1009_s24  ;;  %19 = sbr.rel (!%p17_p13) target bundleno = 6 (0x6), region = 81 }
 0x36f   :  { %596 = vsyncpa [#allocation3], 1 }
 0x370   :  { %598 = vsyncpa [#allocation3 + $0x1], 1 }
 0x371   :  { %599 = vsyncpa [#allocation6], 1 }
 0x372   :  { %600 = vsyncpa [#allocation4], 1 }
 0x373   :  { %602 = vsyncpa [#allocation4 + $0x1], 1 }

</bundles_post_ra>
